<compile_context>
chip_gen: v6e
topology: v6e:2x2x1
jax: 0.10.0
libtpu: 0.0.40
codegen_flags: <defaults>
</compile_context>

<pallas_src>
import jax
import jax.numpy as jnp
from jax.experimental import pallas as pl
from jax.experimental.pallas import tpu as pltpu


_MATMUL_DTYPE = jnp.bfloat16   # MXU operand dtype (accumulation is f32)
_OUT_DTYPE = jnp.bfloat16      # kernel output dtype (halves HBM writeback)


# ----------------------------------------------------------------------------
# Static (prep-time) helpers.
# ----------------------------------------------------------------------------
def _upsample_matrix(in_size, out_size):
    """(out_size, in_size) bilinear align_corners=True interpolation matrix."""
    if in_size == 1:
        return jnp.ones((out_size, 1), jnp.float32)
    src = (jnp.arange(out_size, dtype=jnp.float32)
           * (in_size - 1) / (out_size - 1))
    i0 = jnp.clip(jnp.floor(src).astype(jnp.int32), 0, in_size - 1)
    i1 = jnp.minimum(i0 + 1, in_size - 1)
    frac = src - i0.astype(jnp.float32)
    return (jax.nn.one_hot(i0, in_size, dtype=jnp.float32) * (1.0 - frac)[:, None]
            + jax.nn.one_hot(i1, in_size, dtype=jnp.float32) * frac[:, None])


def _banded_conv_weights(w_hwio, Wo, scale):
    """3x3 conv -> 3 banded matrices over the UNPADDED channel-interleaved W axis.

    Input rows (u*Cin + ci), u in [0, Wo); output cols (v*Cout + co), v in [0, Wo).
    Out-of-range kw taps at the W borders are dropped (== zero padding).  The
    folded BatchNorm scale is multiplied into the output columns so the kernel
    epilogue is bias + ReLU only.  Returns (3, Wo*Cin, Wo*Cout) float32.
    """
    KH, KW, Cin, Cout = w_hwio.shape
    f32 = jnp.float32
    col_scale = jnp.tile(scale.astype(f32), Wo).reshape(1, Wo * Cout)
    mats = []
    for kh in range(KH):
        m = jnp.zeros((Wo * Cin, Wo * Cout), f32)
        for kw in range(KW):
            # output pixel v, tap kw reads input pixel u = v + kw - 1
            sel = jnp.eye(Wo, Wo, k=1 - kw, dtype=f32)
            m = m + jnp.kron(sel, w_hwio[kh, kw].astype(f32))
        mats.append(m * col_scale)
    return jnp.stack(mats, axis=0)


# ----------------------------------------------------------------------------
# Parameters (PyTorch-equivalent) + prep into kernel-ready operands.
# ----------------------------------------------------------------------------
def init_decoder_block_params(key, in_channels, out_channels, skip_channels):
    """Random DecoderBlock params; BatchNorm running stats folded (eval mode)."""
    eps = 1e-5
    c1_in = in_channels + skip_channels

    def conv_bn(key, cin, cout):
        kw, kg, kb, km, kv = jax.random.split(key, 5)
        # PyTorch conv weight (Cout, Cin, 3, 3) -> HWIO (3, 3, Cin, Cout).
        w_oihw = 0.1 * jax.random.normal(kw, (cout, cin, 3, 3), jnp.float32)
        w_hwio = jnp.transpose(w_oihw, (2, 3, 1, 0))
        gamma = 1.0 + 0.1 * jax.random.normal(kg, (cout,), jnp.float32)
        beta = 0.1 * jax.random.normal(kb, (cout,), jnp.float32)
        running_mean = 0.1 * jax.random.normal(km, (cout,), jnp.float32)
        running_var = 1.0 + 0.1 * jnp.abs(
            jax.random.normal(kv, (cout,), jnp.float32))
        scale = gamma / jnp.sqrt(running_var + eps)
        bias = beta - running_mean * scale
        return dict(w=w_hwio, scale=scale, bias=bias)

    k1, k2 = jax.random.split(key, 2)
    return dict(conv1=conv_bn(k1, c1_in, out_channels),
                conv2=conv_bn(k2, out_channels, out_channels))


def prepare_decoder_block(params, in_channels, skip_channels, out_channels,
                          H, W, images_per_step=2):
    """Build the static kernel operands for a fixed spatial size & batch block."""
    Ho, Wo = 2 * H, 2 * W
    Cin, Csk = in_channels, skip_channels
    Nb = images_per_step
    f32 = jnp.float32

    # Bilinear-2x H upsample (align_corners=True) with conv1's H zero padding
    # baked in as zero rows; block-diagonal over the Nb images of a grid step.
    uh = _upsample_matrix(H, Ho)                                # (Ho, H)
    uh_pad = jnp.concatenate(
        [jnp.zeros((1, H), f32), uh, jnp.zeros((1, H), f32)], axis=0)
    uhb = jnp.kron(jnp.eye(Nb, dtype=f32), uh_pad)              # (Nb*(Ho+2), Nb*H)

    # W upsample, channel-interleaved (lane = w*Cin + c), unpadded W (conv1's
    # W border handling lives inside the banded weights).
    uw = _upsample_matrix(W, Wo)                                # (Wo, W)
    uwc = jnp.kron(uw.T, jnp.eye(Cin, dtype=f32))               # (W*Cin, Wo*Cin)

    # Banded conv weights with BN scale folded into the output columns.  conv1
    # is one merged matrix per kh tap over the [x | skip] channel concat.
    w1 = params["conv1"]["w"]                                   # (3,3,Cin+Csk,Cout)
    w1x = _banded_conv_weights(w1[:, :, :Cin, :], Wo, params["conv1"]["scale"])
    w1s = _banded_conv_weights(w1[:, :, Cin:, :], Wo, params["conv1"]["scale"])
    w1m = jnp.concatenate([w1x, w1s], axis=1)                   # (3, Wo*(Cin+Csk), Wo*Cout)
    w2m = _banded_conv_weights(params["conv2"]["w"], Wo,
                               params["conv2"]["scale"])        # (3, Wo*Cout, Wo*Cout)

    # Folded BN biases, tiled per lane column (row 0: conv1, row 1: conv2).
    bias = jnp.stack([jnp.tile(params["conv1"]["bias"], Wo),
                      jnp.tile(params["conv2"]["bias"], Wo)], axis=0)

    return dict(uhb=uhb.astype(_MATMUL_DTYPE), uwc=uwc.astype(_MATMUL_DTYPE),
                w1=w1m.astype(_MATMUL_DTYPE), w2=w2m.astype(_MATMUL_DTYPE),
                bias=bias.astype(f32))


# ----------------------------------------------------------------------------
# The fused Pallas kernel: upsample + concat + conv1+BN+ReLU + conv2+BN+ReLU
# for a block of Nb images.  All intermediates stay in registers/VMEM.
# ----------------------------------------------------------------------------
def _decoder_block_kernel(x_ref, skip_ref, uhb_ref, uwc_ref, w1_ref, w2_ref,
                          bias_ref, o_ref):
    # x_ref   : (Nb, H, W*Cin)              bf16, lane = w*Cin + c
    # skip_ref: (Nb, Ho, Wo*Csk)            bf16
    # uhb_ref : (Nb*(Ho+2), Nb*H)           bf16 block-diag H upsample + zero pad rows
    # uwc_ref : (W*Cin, Wo*Cin)             bf16 W upsample kron
    # w1_ref  : (3, Wo*(Cin+Csk), Wo*Cout)  bf16 banded conv1 ([x|skip] merged, BN scale folded)
    # w2_ref  : (3, Wo*Cout, Wo*Cout)       bf16 banded conv2 (BN scale folded)
    # bias_ref: (2, Wo*Cout)                f32 folded BN biases [conv1; conv2]
    # o_ref   : (Nb, Ho, Wo*Cout)           bf16 lane-dense output slab
    Nb, H, _ = x_ref.shape
    _, Ho, WoCsk = skip_ref.shape
    WoCout = o_ref.shape[2]
    Hp = Ho + 2
    bf = _MATMUL_DTYPE

    # --- bilinear 2x upsample of the whole image block (bf16 MXU, f32 acc);
    #     conv1's H zero-pad rows are already baked into uhb. -----------------
    xs = x_ref[...].reshape(Nb * H, x_ref.shape[2])
    xh = jnp.dot(uhb_ref[...], xs, preferred_element_type=jnp.float32)
    xup = jnp.dot(xh.astype(bf), uwc_ref[...],
                  preferred_element_type=jnp.float32).astype(bf)  # (Nb*Hp, Wo*Cin)

    # --- skip path: H zero-pad via direct zero-row concat (no pad matmuls);
    #     the channel concat with x is a lane concat at a 128-lane boundary. --
    zs = jnp.zeros((1, WoCsk), bf)
    sp = jnp.concatenate(
        [piece for b in range(Nb)
         for piece in (zs, skip_ref[b].astype(bf), zs)], axis=0)  # (Nb*Hp, Wo*Csk)
    a1 = jnp.concatenate([xup, sp], axis=1)            # (Nb*Hp, Wo*(Cin+Csk))

    # --- conv1 (3x3) + BN + ReLU: 3 banded matmuls with M = Nb*Ho ------------
    acc1 = jnp.zeros((Nb * Ho, WoCout), jnp.float32)
    for kh in range(3):
        band = jnp.concatenate(
            [a1[b * Hp + kh: b * Hp + kh + Ho, :] for b in range(Nb)], axis=0)
        acc1 = acc1 + jnp.dot(band, w1_ref[kh],
                              preferred_element_type=jnp.float32)
    h1 = jnp.maximum(acc1 + bias_ref[0:1, :], 0.0).astype(bf)     # (Nb*Ho, Wo*Cout)

    # --- conv2 (3x3) + BN + ReLU; conv1's activation never leaves the core ---
    zc = jnp.zeros((1, WoCout), bf)
    acc2 = jnp.zeros((Nb * Ho, WoCout), jnp.float32)
    for kh in range(3):
        if kh == 1:
            band = h1
        elif kh == 0:   # shift down by one row per image, zero at image top
            band = jnp.concatenate(
                [piece for b in range(Nb)
                 for piece in (zc, h1[b * Ho: b * Ho + Ho - 1, :])], axis=0)
        else:           # shift up by one row per image, zero at image bottom
            band = jnp.concatenate(
                [piece for b in range(Nb)
                 for piece in (h1[b * Ho + 1: (b + 1) * Ho, :], zc)], axis=0)
        acc2 = acc2 + jnp.dot(band, w2_ref[kh],
                              preferred_element_type=jnp.float32)
    y = jnp.maximum(acc2 + bias_ref[1:2, :], 0.0)

    for b in range(Nb):
        o_ref[b] = y[b * Ho: (b + 1) * Ho, :].astype(o_ref.dtype)


# ----------------------------------------------------------------------------
# Kernel-facing forward on the rows layout (preferred: no HBM relayouts).
# ----------------------------------------------------------------------------
@jax.jit
def decoder_block_forward_rows(prep, x_rows, skip_rows):
    """x_rows: (N, H, W*Cin); skip_rows: (N, 2H, 2W*Csk).  Returns
    (N, 2H, 2W*Cout) bf16 in the same channel-interleaved rows layout."""
    x_rows = x_rows.astype(_MATMUL_DTYPE)
    skip_rows = skip_rows.astype(_MATMUL_DTYPE)
    N, H, WCin = x_rows.shape
    _, Ho, WoCsk = skip_rows.shape
    WoCout = prep["w2"].shape[2]
    Nb = prep["uhb"].shape[1] // H          # images per grid step (prep-time choice)
    assert N % Nb == 0, "batch must be a multiple of the prep'd images_per_step"
    # TODO(synk): remainder-batch handling (pad N up to a multiple of Nb).

    return pl.pallas_call(
        _decoder_block_kernel,
        out_shape=jax.ShapeDtypeStruct((N, Ho, WoCout), _OUT_DTYPE),
        grid=(N // Nb,),
        in_specs=[
            pl.BlockSpec((Nb, H, WCin), lambda n: (n, 0, 0)),
            pl.BlockSpec((Nb, Ho, WoCsk), lambda n: (n, 0, 0)),
            pl.BlockSpec(prep["uhb"].shape, lambda n: (0, 0)),
            pl.BlockSpec(prep["uwc"].shape, lambda n: (0, 0)),
            pl.BlockSpec(prep["w1"].shape, lambda n: (0, 0, 0)),
            pl.BlockSpec(prep["w2"].shape, lambda n: (0, 0, 0)),
            pl.BlockSpec(prep["bias"].shape, lambda n: (0, 0)),
        ],
        out_specs=pl.BlockSpec((Nb, Ho, WoCout), lambda n: (n, 0, 0)),
        compiler_params=pltpu.CompilerParams(
            dimension_semantics=("parallel",)),
    )(x_rows, skip_rows, prep["uhb"], prep["uwc"], prep["w1"], prep["w2"],
      prep["bias"])


def decoder_block_forward_nchw(prep, x_nchw, skip_nchw):
    """PyTorch-layout interface (NCHW in / out).  NOTE: the two transposes here
    are pure HBM relayout; in a full TransUNet decoder keep activations in the
    (N, H, W*C) rows layout and call decoder_block_forward_rows directly."""
    if skip_nchw is None:
        # TODO(synk): skip=None branch of DecoderBlock.forward is not fused here.
        raise NotImplementedError("fused kernel expects a skip tensor")
    N, Cin, H, W = x_nchw.shape
    Csk = skip_nchw.shape[1]
    Ho, Wo = 2 * H, 2 * W
    x_rows = jnp.transpose(x_nchw, (0, 2, 3, 1)).reshape(N, H, W * Cin)
    s_rows = jnp.transpose(skip_nchw, (0, 2, 3, 1)).reshape(N, Ho, Wo * Csk)
    out_rows = decoder_block_forward_rows(
        prep, x_rows.astype(_MATMUL_DTYPE), s_rows.astype(_MATMUL_DTYPE))
    Cout = out_rows.shape[2] // Wo
    out = out_rows.reshape(N, Ho, Wo, Cout)
    return jnp.transpose(out, (0, 3, 1, 2))


# ----------------------------------------------------------------------------
# Pure-JAX f32 reference (same math as the PyTorch module, eval-mode BN).
# ----------------------------------------------------------------------------
def _reference_forward(params, x_nchw, skip_nchw):
    hp = jax.lax.Precision.HIGHEST
    x = jnp.transpose(x_nchw, (0, 2, 3, 1)).astype(jnp.float32)
    N, H, W, _ = x.shape
    uh = _upsample_matrix(H, 2 * H)
    uw = _upsample_matrix(W, 2 * W)
    x = jnp.einsum("oh,nhwc->nowc", uh, x, precision=hp)
    x = jnp.einsum("pw,nowc->nopc", uw, x, precision=hp)
    skip = jnp.transpose(skip_nchw, (0, 2, 3, 1)).astype(jnp.float32)
    x = jnp.concatenate([x, skip], axis=-1)

    def conv_bn_relu(x, w, scale, bias):
        y = jax.lax.conv_general_dilated(
            x, w, window_strides=(1, 1), padding="SAME",
            dimension_numbers=("NHWC", "HWIO", "NHWC"), precision=hp)
        return jnp.maximum(y * scale + bias, 0.0)

    x = conv_bn_relu(x, params["conv1"]["w"], params["conv1"]["scale"],
                     params["conv1"]["bias"])
    x = conv_bn_relu(x, params["conv2"]["w"], params["conv2"]["scale"],
                     params["conv2"]["bias"])
    return jnp.transpose(x, (0, 3, 1, 2))


if __name__ == "__main__":
    key = jax.random.PRNGKey(0)
    k_param, k_x, k_skip = jax.random.split(key, 3)

    # Small synthetic shapes (NCHW, matching the PyTorch module's convention).
    N = 2
    in_channels, skip_channels, out_channels = 8, 4, 8
    H = W = 8                                   # upsampled -> 16 x 16
    # Wo * out_channels = 128 -> one full unmasked 128-lane vreg per output row.
    # images_per_step = N stacks both images into one grid step so the banded
    # matmuls run with M = N*Ho = 32 (vs 16 per single image).  For larger
    # batches pick images_per_step ~ 128 // Ho so M >= 128.

    params = init_decoder_block_params(k_param, in_channels, out_channels,
                                       skip_channels)
    prep = prepare_decoder_block(params, in_channels, skip_channels,
                                 out_channels, H, W, images_per_step=N)

    x = jax.random.normal(k_x, (N, in_channels, H, W), jnp.float32)
    skip = jax.random.normal(k_skip, (N, skip_channels, 2 * H, 2 * W),
                             jnp.float32)

    out = decoder_block_forward_nchw(prep, x, skip)
    out = jax.block_until_ready(out)
    assert out.shape == (N, out_channels, 2 * H, 2 * W), out.shape

    # Correctness vs pure-JAX f32 reference.  bf16 operands + bf16 output
    # bound the error; use a relative max-error check plus a mean-error check.
    ref = _reference_forward(params, x, skip)
    abs_err = jnp.abs(out.astype(jnp.float32) - ref)
    max_rel = float(jnp.max(abs_err) / (jnp.max(jnp.abs(ref)) + 1e-6))
    mean_err = float(jnp.mean(abs_err))
    assert max_rel < 7.5e-2 and mean_err < 2e-2, (max_rel, mean_err)

    print("KERNEL_OK")
</pallas_src>

<mosaic_0001>
module attributes {stable_mosaic.version = 11 : i64} {
  func.func @_decoder_block_kernel(%arg0: i32, %arg1: memref<2x8x64xbf16, #tpu.memory_space<vmem>>, %arg2: memref<2x16x64xbf16, #tpu.memory_space<vmem>>, %arg3: memref<36x16xbf16, #tpu.memory_space<vmem>>, %arg4: memref<64x128xbf16, #tpu.memory_space<vmem>>, %arg5: memref<3x192x128xbf16, #tpu.memory_space<vmem>>, %arg6: memref<3x128x128xbf16, #tpu.memory_space<vmem>>, %arg7: memref<2x128xf32, #tpu.memory_space<vmem>>, %arg8: memref<2x16x128xbf16, #tpu.memory_space<vmem>>) attributes {dimension_semantics = [#tpu.dimension_semantics<parallel>], iteration_bounds = array<i64: 1>, scalar_prefetch = 0 : i64, scratch_operands = 0 : i64, tpu.core_type = #tpu.core_type<tc>, window_params = [{transform_indices = @transform_0, window_bounds = array<i64: 2, 8, 64>}, {transform_indices = @transform_1, window_bounds = array<i64: 2, 16, 64>}, {pipeline_mode = #tpu.pipeline_mode<synchronous>, transform_indices = @transform_2, window_bounds = array<i64: 36, 16>}, {pipeline_mode = #tpu.pipeline_mode<synchronous>, transform_indices = @transform_3, window_bounds = array<i64: 64, 128>}, {pipeline_mode = #tpu.pipeline_mode<synchronous>, transform_indices = @transform_4, window_bounds = array<i64: 3, 192, 128>}, {pipeline_mode = #tpu.pipeline_mode<synchronous>, transform_indices = @transform_5, window_bounds = array<i64: 3, 128, 128>}, {pipeline_mode = #tpu.pipeline_mode<synchronous>, transform_indices = @transform_6, window_bounds = array<i64: 2, 128>}, {transform_indices = @transform_7, window_bounds = array<i64: 2, 16, 128>}]} {
    %c0 = arith.constant 0 : index
    %c0_0 = arith.constant 0 : index
    %c0_1 = arith.constant 0 : index
    %0 = vector.load %arg1[%c0, %c0_0, %c0_1] : memref<2x8x64xbf16, #tpu.memory_space<vmem>>, vector<2x8x64xbf16>
    %1 = vector.shape_cast %0 : vector<2x8x64xbf16> to vector<16x64xbf16>
    %c0_2 = arith.constant 0 : index
    %c0_3 = arith.constant 0 : index
    %2 = vector.load %arg3[%c0_2, %c0_3] : memref<36x16xbf16, #tpu.memory_space<vmem>>, vector<36x16xbf16>
    %cst = arith.constant dense<0.000000e+00> : vector<36x64xf32>
    %3 = tpu.matmul %2, %1, %cst {dimension_numbers = #tpu.dot_dimension_numbers<[1], [0], [0], [1], [0, 0, 1, 1], [], []>} : vector<36x16xbf16>, vector<16x64xbf16>, vector<36x64xf32> -> vector<36x64xf32>
    %4 = arith.truncf %3 : vector<36x64xf32> to vector<36x64xbf16>
    %c0_4 = arith.constant 0 : index
    %c0_5 = arith.constant 0 : index
    %5 = vector.load %arg4[%c0_4, %c0_5] : memref<64x128xbf16, #tpu.memory_space<vmem>>, vector<64x128xbf16>
    %cst_6 = arith.constant dense<0.000000e+00> : vector<36x128xf32>
    %6 = tpu.matmul %4, %5, %cst_6 {dimension_numbers = #tpu.dot_dimension_numbers<[1], [0], [0], [1], [0, 0, 1, 1], [], []>} : vector<36x64xbf16>, vector<64x128xbf16>, vector<36x128xf32> -> vector<36x128xf32>
    %7 = arith.truncf %6 : vector<36x128xf32> to vector<36x128xbf16>
    %cst_7 = arith.constant 0.000000e+00 : bf16
    %8 = vector.broadcast %cst_7 : bf16 to vector<1x64xbf16>
    %c0_8 = arith.constant 0 : index
    %c0_9 = arith.constant 0 : index
    %c0_10 = arith.constant 0 : index
    %9 = vector.load %arg2[%c0_8, %c0_9, %c0_10] : memref<2x16x64xbf16, #tpu.memory_space<vmem>>, vector<1x16x64xbf16>
    %10 = vector.shape_cast %9 : vector<1x16x64xbf16> to vector<16x64xbf16>
    %c1 = arith.constant 1 : index
    %c0_11 = arith.constant 0 : index
    %c0_12 = arith.constant 0 : index
    %11 = vector.load %arg2[%c1, %c0_11, %c0_12] : memref<2x16x64xbf16, #tpu.memory_space<vmem>>, vector<1x16x64xbf16>
    %12 = vector.shape_cast %11 : vector<1x16x64xbf16> to vector<16x64xbf16>
    %13 = tpu.concatenate %8, %10, %8, %8, %12, %8 in 0 : vector<1x64xbf16>, vector<16x64xbf16>, vector<1x64xbf16>, vector<1x64xbf16>, vector<16x64xbf16>, vector<1x64xbf16> -> vector<36x64xbf16>
    %14 = tpu.concatenate %7, %13 in 1 : vector<36x128xbf16>, vector<36x64xbf16> -> vector<36x192xbf16>
    %cst_13 = arith.constant 0.000000e+00 : f32
    %15 = vector.broadcast %cst_13 : f32 to vector<32x128xf32>
    %16 = vector.extract_strided_slice %14 {offsets = [0, 0], sizes = [16, 192], strides = [1, 1]} : vector<36x192xbf16> to vector<16x192xbf16>
    %17 = vector.extract_strided_slice %14 {offsets = [18, 0], sizes = [16, 192], strides = [1, 1]} : vector<36x192xbf16> to vector<16x192xbf16>
    %18 = tpu.concatenate %16, %17 in 0 : vector<16x192xbf16>, vector<16x192xbf16> -> vector<32x192xbf16>
    %c0_14 = arith.constant 0 : index
    %c0_15 = arith.constant 0 : index
    %c0_16 = arith.constant 0 : index
    %19 = vector.load %arg5[%c0_14, %c0_15, %c0_16] : memref<3x192x128xbf16, #tpu.memory_space<vmem>>, vector<1x192x128xbf16>
    %20 = vector.shape_cast %19 : vector<1x192x128xbf16> to vector<192x128xbf16>
    %cst_17 = arith.constant dense<0.000000e+00> : vector<32x128xf32>
    %21 = tpu.matmul %18, %20, %cst_17 {dimension_numbers = #tpu.dot_dimension_numbers<[1], [0], [0], [1], [0, 0, 1, 1], [], []>} : vector<32x192xbf16>, vector<192x128xbf16>, vector<32x128xf32> -> vector<32x128xf32>
    %22 = arith.addf %15, %21 : vector<32x128xf32>
    %23 = vector.extract_strided_slice %14 {offsets = [1, 0], sizes = [16, 192], strides = [1, 1]} : vector<36x192xbf16> to vector<16x192xbf16>
    %24 = vector.extract_strided_slice %14 {offsets = [19, 0], sizes = [16, 192], strides = [1, 1]} : vector<36x192xbf16> to vector<16x192xbf16>
    %25 = tpu.concatenate %23, %24 in 0 : vector<16x192xbf16>, vector<16x192xbf16> -> vector<32x192xbf16>
    %c1_18 = arith.constant 1 : index
    %c0_19 = arith.constant 0 : index
    %c0_20 = arith.constant 0 : index
    %26 = vector.load %arg5[%c1_18, %c0_19, %c0_20] : memref<3x192x128xbf16, #tpu.memory_space<vmem>>, vector<1x192x128xbf16>
    %27 = vector.shape_cast %26 : vector<1x192x128xbf16> to vector<192x128xbf16>
    %cst_21 = arith.constant dense<0.000000e+00> : vector<32x128xf32>
    %28 = tpu.matmul %25, %27, %cst_21 {dimension_numbers = #tpu.dot_dimension_numbers<[1], [0], [0], [1], [0, 0, 1, 1], [], []>} : vector<32x192xbf16>, vector<192x128xbf16>, vector<32x128xf32> -> vector<32x128xf32>
    %29 = arith.addf %22, %28 : vector<32x128xf32>
    %30 = vector.extract_strided_slice %14 {offsets = [2, 0], sizes = [16, 192], strides = [1, 1]} : vector<36x192xbf16> to vector<16x192xbf16>
    %31 = vector.extract_strided_slice %14 {offsets = [20, 0], sizes = [16, 192], strides = [1, 1]} : vector<36x192xbf16> to vector<16x192xbf16>
    %32 = tpu.concatenate %30, %31 in 0 : vector<16x192xbf16>, vector<16x192xbf16> -> vector<32x192xbf16>
    %c2 = arith.constant 2 : index
    %c0_22 = arith.constant 0 : index
    %c0_23 = arith.constant 0 : index
    %33 = vector.load %arg5[%c2, %c0_22, %c0_23] : memref<3x192x128xbf16, #tpu.memory_space<vmem>>, vector<1x192x128xbf16>
    %34 = vector.shape_cast %33 : vector<1x192x128xbf16> to vector<192x128xbf16>
    %cst_24 = arith.constant dense<0.000000e+00> : vector<32x128xf32>
    %35 = tpu.matmul %32, %34, %cst_24 {dimension_numbers = #tpu.dot_dimension_numbers<[1], [0], [0], [1], [0, 0, 1, 1], [], []>} : vector<32x192xbf16>, vector<192x128xbf16>, vector<32x128xf32> -> vector<32x128xf32>
    %36 = arith.addf %29, %35 : vector<32x128xf32>
    %c0_25 = arith.constant 0 : index
    %c0_26 = arith.constant 0 : index
    %37 = vector.load %arg7[%c0_25, %c0_26] : memref<2x128xf32, #tpu.memory_space<vmem>>, vector<1x128xf32>
    %38 = vector.broadcast %37 : vector<1x128xf32> to vector<32x128xf32>
    %39 = arith.addf %36, %38 : vector<32x128xf32>
    %cst_27 = arith.constant 0.000000e+00 : f32
    %40 = vector.broadcast %cst_27 : f32 to vector<32x128xf32>
    %41 = arith.maximumf %39, %40 : vector<32x128xf32>
    %42 = arith.truncf %41 : vector<32x128xf32> to vector<32x128xbf16>
    %cst_28 = arith.constant 0.000000e+00 : bf16
    %43 = vector.broadcast %cst_28 : bf16 to vector<1x128xbf16>
    %cst_29 = arith.constant 0.000000e+00 : f32
    %44 = vector.broadcast %cst_29 : f32 to vector<32x128xf32>
    %45 = vector.extract_strided_slice %42 {offsets = [0, 0], sizes = [15, 128], strides = [1, 1]} : vector<32x128xbf16> to vector<15x128xbf16>
    %46 = vector.extract_strided_slice %42 {offsets = [16, 0], sizes = [15, 128], strides = [1, 1]} : vector<32x128xbf16> to vector<15x128xbf16>
    %47 = tpu.concatenate %43, %45, %43, %46 in 0 : vector<1x128xbf16>, vector<15x128xbf16>, vector<1x128xbf16>, vector<15x128xbf16> -> vector<32x128xbf16>
    %c0_30 = arith.constant 0 : index
    %c0_31 = arith.constant 0 : index
    %c0_32 = arith.constant 0 : index
    %48 = vector.load %arg6[%c0_30, %c0_31, %c0_32] : memref<3x128x128xbf16, #tpu.memory_space<vmem>>, vector<1x128x128xbf16>
    %49 = vector.shape_cast %48 : vector<1x128x128xbf16> to vector<128x128xbf16>
    %cst_33 = arith.constant dense<0.000000e+00> : vector<32x128xf32>
    %50 = tpu.matmul %47, %49, %cst_33 {dimension_numbers = #tpu.dot_dimension_numbers<[1], [0], [0], [1], [0, 0, 1, 1], [], []>} : vector<32x128xbf16>, vector<128x128xbf16>, vector<32x128xf32> -> vector<32x128xf32>
    %51 = arith.addf %44, %50 : vector<32x128xf32>
    %c1_34 = arith.constant 1 : index
    %c0_35 = arith.constant 0 : index
    %c0_36 = arith.constant 0 : index
    %52 = vector.load %arg6[%c1_34, %c0_35, %c0_36] : memref<3x128x128xbf16, #tpu.memory_space<vmem>>, vector<1x128x128xbf16>
    %53 = vector.shape_cast %52 : vector<1x128x128xbf16> to vector<128x128xbf16>
    %cst_37 = arith.constant dense<0.000000e+00> : vector<32x128xf32>
    %54 = tpu.matmul %42, %53, %cst_37 {dimension_numbers = #tpu.dot_dimension_numbers<[1], [0], [0], [1], [0, 0, 1, 1], [], []>} : vector<32x128xbf16>, vector<128x128xbf16>, vector<32x128xf32> -> vector<32x128xf32>
    %55 = arith.addf %51, %54 : vector<32x128xf32>
    %56 = vector.extract_strided_slice %42 {offsets = [1, 0], sizes = [15, 128], strides = [1, 1]} : vector<32x128xbf16> to vector<15x128xbf16>
    %57 = vector.extract_strided_slice %42 {offsets = [17, 0], sizes = [15, 128], strides = [1, 1]} : vector<32x128xbf16> to vector<15x128xbf16>
    %58 = tpu.concatenate %56, %43, %57, %43 in 0 : vector<15x128xbf16>, vector<1x128xbf16>, vector<15x128xbf16>, vector<1x128xbf16> -> vector<32x128xbf16>
    %c2_38 = arith.constant 2 : index
    %c0_39 = arith.constant 0 : index
    %c0_40 = arith.constant 0 : index
    %59 = vector.load %arg6[%c2_38, %c0_39, %c0_40] : memref<3x128x128xbf16, #tpu.memory_space<vmem>>, vector<1x128x128xbf16>
    %60 = vector.shape_cast %59 : vector<1x128x128xbf16> to vector<128x128xbf16>
    %cst_41 = arith.constant dense<0.000000e+00> : vector<32x128xf32>
    %61 = tpu.matmul %58, %60, %cst_41 {dimension_numbers = #tpu.dot_dimension_numbers<[1], [0], [0], [1], [0, 0, 1, 1], [], []>} : vector<32x128xbf16>, vector<128x128xbf16>, vector<32x128xf32> -> vector<32x128xf32>
    %62 = arith.addf %55, %61 : vector<32x128xf32>
    %c1_42 = arith.constant 1 : index
    %c0_43 = arith.constant 0 : index
    %63 = vector.load %arg7[%c1_42, %c0_43] : memref<2x128xf32, #tpu.memory_space<vmem>>, vector<1x128xf32>
    %64 = vector.broadcast %63 : vector<1x128xf32> to vector<32x128xf32>
    %65 = arith.addf %62, %64 : vector<32x128xf32>
    %cst_44 = arith.constant 0.000000e+00 : f32
    %66 = vector.broadcast %cst_44 : f32 to vector<32x128xf32>
    %67 = arith.maximumf %65, %66 : vector<32x128xf32>
    %68 = vector.extract_strided_slice %67 {offsets = [0, 0], sizes = [16, 128], strides = [1, 1]} : vector<32x128xf32> to vector<16x128xf32>
    %69 = arith.truncf %68 : vector<16x128xf32> to vector<16x128xbf16>
    %c0_45 = arith.constant 0 : index
    %c0_46 = arith.constant 0 : index
    %c0_47 = arith.constant 0 : index
    %70 = vector.load %arg8[%c0_45, %c0_46, %c0_47] : memref<2x16x128xbf16, #tpu.memory_space<vmem>>, vector<1x16x128xbf16>
    %71 = vector.shape_cast %70 : vector<1x16x128xbf16> to vector<16x128xbf16>
    %72 = vector.shape_cast %69 : vector<16x128xbf16> to vector<1x16x128xbf16>
    tpu.vector_store %arg8[%c0_45, %c0_46, %c0_47], %72 {strides = array<i32>} : memref<2x16x128xbf16, #tpu.memory_space<vmem>>, vector<1x16x128xbf16>,
    %73 = vector.extract_strided_slice %67 {offsets = [16, 0], sizes = [16, 128], strides = [1, 1]} : vector<32x128xf32> to vector<16x128xf32>
    %74 = arith.truncf %73 : vector<16x128xf32> to vector<16x128xbf16>
    %c1_48 = arith.constant 1 : index
    %c0_49 = arith.constant 0 : index
    %c0_50 = arith.constant 0 : index
    %75 = vector.load %arg8[%c1_48, %c0_49, %c0_50] : memref<2x16x128xbf16, #tpu.memory_space<vmem>>, vector<1x16x128xbf16>
    %76 = vector.shape_cast %75 : vector<1x16x128xbf16> to vector<16x128xbf16>
    %77 = vector.shape_cast %74 : vector<16x128xbf16> to vector<1x16x128xbf16>
    tpu.vector_store %arg8[%c1_48, %c0_49, %c0_50], %77 {strides = array<i32>} : memref<2x16x128xbf16, #tpu.memory_space<vmem>>, vector<1x16x128xbf16>,
    return
  }
  func.func @transform_0(%arg0: i32) -> (i32, i32, i32) {
    %c0_i32 = arith.constant 0 : i32
    %c0_i32_0 = arith.constant 0 : i32
    %c0_i32_1 = arith.constant 0 : i32
    return %arg0, %c0_i32, %c0_i32_0 : i32, i32, i32
  }
  func.func @transform_1(%arg0: i32) -> (i32, i32, i32) {
    %c0_i32 = arith.constant 0 : i32
    %c0_i32_0 = arith.constant 0 : i32
    %c0_i32_1 = arith.constant 0 : i32
    return %arg0, %c0_i32, %c0_i32_0 : i32, i32, i32
  }
  func.func @transform_2(%arg0: i32) -> (i32, i32) {
    %c0_i32 = arith.constant 0 : i32
    %c0_i32_0 = arith.constant 0 : i32
    %c0_i32_1 = arith.constant 0 : i32
    return %c0_i32, %c0_i32_0 : i32, i32
  }
  func.func @transform_3(%arg0: i32) -> (i32, i32) {
    %c0_i32 = arith.constant 0 : i32
    %c0_i32_0 = arith.constant 0 : i32
    %c0_i32_1 = arith.constant 0 : i32
    return %c0_i32, %c0_i32_0 : i32, i32
  }
  func.func @transform_4(%arg0: i32) -> (i32, i32, i32) {
    %c0_i32 = arith.constant 0 : i32
    %c0_i32_0 = arith.constant 0 : i32
    %c0_i32_1 = arith.constant 0 : i32
    %c0_i32_2 = arith.constant 0 : i32
    return %c0_i32, %c0_i32_0, %c0_i32_1 : i32, i32, i32
  }
  func.func @transform_5(%arg0: i32) -> (i32, i32, i32) {
    %c0_i32 = arith.constant 0 : i32
    %c0_i32_0 = arith.constant 0 : i32
    %c0_i32_1 = arith.constant 0 : i32
    %c0_i32_2 = arith.constant 0 : i32
    return %c0_i32, %c0_i32_0, %c0_i32_1 : i32, i32, i32
  }
  func.func @transform_6(%arg0: i32) -> (i32, i32) {
    %c0_i32 = arith.constant 0 : i32
    %c0_i32_0 = arith.constant 0 : i32
    %c0_i32_1 = arith.constant 0 : i32
    return %c0_i32, %c0_i32_0 : i32, i32
  }
  func.func @transform_7(%arg0: i32) -> (i32, i32, i32) {
    %c0_i32 = arith.constant 0 : i32
    %c0_i32_0 = arith.constant 0 : i32
    %c0_i32_1 = arith.constant 0 : i32
    return %arg0, %c0_i32, %c0_i32_0 : i32, i32, i32
  }
}

</mosaic_0001>

<bundles_post_ra>
// kernel: decoder_block_forward_rows.1
= control target key start
LH: loop header
LB: loop body
LE: loop exit
PB: predicated region body
PF: predicated region fallthrough
CT: control target
= control target key end

     0   :  { %12 = vsyncpa [#allocation3], 0  ;;  %s1915_s0 = inlined_call_operand.vmem [shape: bf16[2,8,64], index: 0, kind: input, shape index: {}]   ;;  %s1916_s1 = inlined_call_operand.vmem [shape: bf16[2,16,64], index: 1, kind: input, shape index: {}]   ;;  %s1917_s2 = inlined_call_operand.vmem [shape: bf16[36,16], index: 2, kind: input, shape index: {}]   ;;  %s1918_s3 = inlined_call_operand.hbm [shape: bf16[64,128], index: 3, kind: input, shape index: {}]   ;;  %s1919_s4 = inlined_call_operand.hbm [shape: bf16[3,192,128], index: 4, kind: input, shape index: {}]   ;;  %s1920_s5 = inlined_call_operand.hbm [shape: bf16[3,128,128], index: 5, kind: input, shape index: {}]   ;;  %s1921_s6 = inlined_call_operand.vmem [shape: f32[2,128], index: 6, kind: input, shape index: {}]   ;;  %s1922_s7 = inlined_call_operand.hbm [shape: bf16[2,16,128], index: 7, kind: output, shape index: {}]  }
   0x1   :  { %13 = vsyncpa [#allocation6], 0 }
   0x2   :  { %14 = vsyncpa [#allocation4], 0  ;;  %s1698_s24 = smov [#allocation5]   ;;  %s1699_s26 = smov [#allocation2]  }
   0x3   :  { %s38_s25 = sshll.u32 %s1698_s24, 4  ;;  %s26_s27 = sshll.u32 %s1699_s26, 4  ;;  %s39_s25 = int_to_ptr.vmem [resolvable:$true] %s38_s25  ;;  %s27_s27 = int_to_ptr.vmem [resolvable:$true] %s26_s27 }
   0x4   :  { %s1620_s28 = scalar_lea.vmem %s39_s25, 4608  ;;  %p1625_p1 = scmp.lt.s32.totalorder %s39_s25, %s39_s25 }
   0x5   :  { %p1621_p0 = scmp.ne.s32.totalorder %s39_s25, %s1620_s28  ;;  %p1626_p2 = scmp.lt.s32.totalorder %s1620_s28, %s1620_s28 }
   0x7   :  { %p1627_p3 = por %p1626_p2, %p1625_p1 }
   0x9   :  { %p1628_p4 = pnand %p1627_p3, %p1621_p0 }
   0xb   :  { %1631 = shalt.err (!%p1628_p4)
}
   0xc   :  { %s1700_s29 = smov 64   ;;  %s1701_s30 = smov 4  }
   0xd   :  { %44 = dma.hbm_to_vmem [thread:$0]  %s1919_s4, 4608, %s39_s25, [#allocation6], %s1700_s29, %s1700_s29, %s1701_s30  }
   0xe   :  { %s1640_s10 = scalar_lea.vmem %s27_s27, 512  ;;  %p1645_p6 = scmp.lt.s32.totalorder %s27_s27, %s27_s27 }
   0xf   :  { %p1641_p5 = scmp.ne.s32.totalorder %s27_s27, %s1640_s10  ;;  %p1646_p7 = scmp.lt.s32.totalorder %s1640_s10, %s1640_s10 }
  0x11   :  { %p1647_p8 = por %p1646_p7, %p1645_p6 }
  0x13   :  { %p1648_p9 = pnand %p1647_p8, %p1641_p5 }
  0x15   :  { %1651 = shalt.err (!%p1648_p9)
}
  0x16   :  { %32 = dma.hbm_to_vmem [thread:$0]  %s1918_s3, 512, %s27_s27, [#allocation3], %s1700_s29, %s1700_s29, %s1701_s30  }
  0x17   :  { %s1702_s13 = smov [#allocation7]  }
  0x18   :  { %s50_s14 = sshll.u32 %s1702_s13, 4  ;;  %s51_s14 = int_to_ptr.vmem [resolvable:$true] %s50_s14 }
  0x19   :  { %s1660_s15 = scalar_lea.vmem %s51_s14, 3072  ;;  %p1665_p11 = scmp.lt.s32.totalorder %s51_s14, %s51_s14 }
  0x1a   :  { %p1661_p10 = scmp.ne.s32.totalorder %s51_s14, %s1660_s15  ;;  %p1666_p12 = scmp.lt.s32.totalorder %s1660_s15, %s1660_s15 }
  0x1c   :  { %p1667_p13 = por %p1666_p12, %p1665_p11 }
  0x1e   :  { %p1668_p0 = pnand %p1667_p13, %p1661_p10 }
  0x20   :  { %1671 = shalt.err (!%p1668_p0)
}
  0x21   :  { %56 = dma.hbm_to_vmem [thread:$0]  %s1920_s5, 3072, %s51_s14, [#allocation6], %s1700_s29, %s1700_s29, %s1701_s30  }
  0x22   :  { %1692 = dma.done.wait [#allocation3], 512  }
  0x23   :  { %1693 = vsyncadd [#allocation3], 4294966784 }
  0x24   :  { %1694 = dma.done.wait [#allocation6], 7680  }
  0x25   :  { %1695 = vsyncadd [#allocation6], 4294959616  ;;  %v1703_v0 = vmov 0.0   ;;  %vm1704_vm0 = vmmov 0   ;;  %v1542_v1 = vld [vmem:[%s1915_s0] sm:$0xff]   ;;  %vm95_vm1 = vcmask 130048  }
  0x26   :  { %1439 = vmatprep.subr.bf16.mxu0 %v1703_v0  ;;  %1441 = vmatprep.mubr.msk.bf16.mxu0 %vm1704_vm0, %v1703_v0  ;;  %v1543_v2 = vld [vmem:[%s1917_s2] sm:$0xff]   ;;  %v1546_v3 = vld [vmem:[#allocation2 + $0x18] sm:$0xff]   ;;  %v1547_v4 = vld [vmem:[#allocation2 + $0x10] sm:$0xff]   ;;  %v1705_v9 = vmov 0   ;;  %vm196_vm2 = vcmask 523264   ;;  %vm298_vm3 = vcmask 1040384  }
  0x27   :  { %1453 = vmatprep.subr.bf16.mxu1 %v1703_v0  ;;  %1461 = vmatprep.mubr.msk.bf16.mxu1 %vm1704_vm0, %v1703_v0  ;;  %v1544_v5 = vld [vmem:[%s1917_s2 + $0x8] sm:$0xff]   ;;  %v1545_v6 = vld [vmem:[%s1917_s2 + $0x10] ss:$0 sps:$4 sm:$0x33]   ;;  %v1549_v8 = vld [vmem:[#allocation2] sm:$0xff]   ;;  %vm308_vm6 = vcmask 1041408  }
  0x28   :  { %1440 = vmatpush3.bf16.msra.mxu0 %v1542_v1  ;;  %1454 = vmatpush3.bf16.msra.mxu1 %v1546_v3  ;;  %v1548_v7 = vld [vmem:[#allocation2 + $0x8] sm:$0xff]   ;;  %v1553_v10 = vld [vmem:[#allocation5 + $0x98] sm:$0xff]   ;;  %v1555_v11 = vld [vmem:[#allocation5 + $0x90] sm:$0xff]   ;;  %vm299_vm4 = vsmask.f32 256  ;;  %vm317_vm10 = vcmask 1046528  }
  0x29   :  { %1455 = vmatprep.subr.bf16.mxu1 %v1703_v0  ;;  %508 = vmatprep.subr.bf16.mxu0 %v1705_v9  ;;  %v1557_v12 = vld [vmem:[#allocation5 + $0x88] sm:$0xff]   ;;  %v1559_v13 = vld [vmem:[#allocation5 + $0x80] sm:$0xff]   ;;  %v1561_v14 = vld [vmem:[#allocation5 + $0x78] sm:$0xff]   ;;  %vm309_vm7 = vsmask.f32 1280  ;;  %vm690_vm12 = vcmask 1045504  }
  0x2a   :  { %v1563_v15 = vld [vmem:[#allocation5 + $0x70] sm:$0xff]   ;;  %v1565_v16 = vld [vmem:[#allocation5 + $0x68] sm:$0xff]   ;;  %v1550_v20 = vld [vmem:[#allocation5 + $0x38] sm:$0xff]   ;;  %vm349_vm9 = vsmask.f32 7424  ;;  %vm1120_vm13 = vcmask 1047552  }
  0x2b   :  { %1442 = vmatmul.mubr.msk.bf16.vlgmr.msra.gmra.mxu0 %vm95_vm1, %v1543_v2  ;;  %v1551_v24 = vld [vmem:[#allocation5 + $0x30] sm:$0xff]   ;;  %v1552_v27 = vld [vmem:[#allocation5 + $0x28] sm:$0xff]   ;;  %v1554_v31 = vld [vmem:[#allocation5 + $0x20] sm:$0xff]   ;;  %vm375_vm11 = vsmask.f32 6400  ;;  %s1706_s28 = smov [#allocation8]  }
  0x2c   :  { %1445 = vmatprep.mubr.msk.bf16.mxu0 %vm1704_vm0, %v1703_v0  ;;  %1456 = vmatpush3.bf16.msra.mxu1 %v1547_v4  ;;  %v1556_v35 = vld [vmem:[#allocation5 + $0x18] sm:$0xff]   ;;  %v1558_v37 = vld [vmem:[#allocation5 + $0x10] sm:$0xff]   ;;  %v1560_v38 = vld [vmem:[#allocation5 + $0x8] sm:$0xff]   ;;  %s1281_s8 = sshll.u32 %s1706_s28, 4  ;;  %s1282_s8 = int_to_ptr.vmem [resolvable:$true] %s1281_s8 }
  0x2d   :  { %1457 = vmatprep.subr.bf16.mxu1 %v1703_v0  ;;  %509 = vmatpush1.bf16.msra.mxu0 %v1553_v10  ;;  %v1562_v39 = vld [vmem:[#allocation5] sm:$0xff]   ;;  %v1564_v40 = vld [vmem:[#allocation5 + $0x58] sm:$0xff]   ;;  %v1566_v41 = vld [vmem:[#allocation5 + $0x50] sm:$0xff]   ;;  %p1677_p2 = scmp.lt.s32.totalorder %s1282_s8, %s1282_s8 }
  0x2e   :  { %510 = vmatprep.subr.bf16.mxu0 %v1705_v9  ;;  %v1571_v42 = vld [vmem:[%s1916_s1] sm:$0xff]   ;;  %v1568_v44 = vld [vmem:[#allocation5 + $0x48] sm:$0xff]   ;;  %v1569_v48 = vld [vmem:[#allocation5 + $0xb8] sm:$0xff]  }
  0x2f   :  { %v1567_v43 = vld [vmem:[#allocation5 + $0x60] sm:$0xff]   ;;  %v276_v45 = vshrl.u32 %v1571_v42, 16  ;;  %v279_v47 = vshll.u32 %v1571_v42, 16  ;;  %vm1822_vm5 = vmand %vm298_vm3, %vm299_vm4  ;;  %v1572_v52 = vld [vmem:[%s1916_s1 + $0x8] sm:$0xff]  }
  0x30   :  { %1458 = vmatpush3.bf16.msra.mxu1 %v1548_v7  ;;  %v1570_v49 = vld [vmem:[#allocation5 + $0x40] sm:$0xff]   ;;  %v1573_v54 = vld [vmem:[#allocation5 + $0xb0] sm:$0xff]   ;;  %v290_v55 = vshrl.u32 %v1572_v52, 16  ;;  %v293_v56 = vshll.u32 %v1572_v52, 16  ;;  %v1574_v62 = vld [vmem:[#allocation5 + $0xa8] sm:$0xff]  }
  0x31   :  { %1459 = vmatprep.subr.bf16.mxu1 %v1703_v0  ;;  %511 = vmatpush1.bf16.msra.mxu0 %v1555_v11  ;;  %v278_v46 = vrot.slane %v276_v45, 7  ;;  %vm310_vm8 = vmand %vm308_vm6, %vm309_vm7  ;;  %v1575_v3 = vld [vmem:[#allocation5 + $0xa0] sm:$0xff]  }
  0x32   :  { %512 = vmatprep.subr.bf16.mxu0 %v1705_v9  ;;  %v292_v57 = vrot.slane %v290_v55, 6  ;;  %v295_v58 = vrot.slane %v293_v56, 7  ;;  %vm1893_vm14 = vmand %vm1120_vm13, %vm349_vm9 }
  0x33   :  { %1446 = vmatmul.mubr.msk.bf16.gmra.mxu0 %vm95_vm1, %v1544_v5  ;;  %v281_v50 = vor.u32 %v279_v47, %v278_v46  ;;  %v302_v59 = vsel %vm1822_vm5, %v278_v46, 0  ;;  %v1576_v47 = vld [vmem:[#allocation5 + $0xf8] sm:$0xff]  }
  0x34   :  { %1449 = vmatprep.mubr.msk.bf16.mxu0 %vm1704_vm0, %v1703_v0  ;;  %1460 = vmatpush3.bf16.msra.mxu1 %v1549_v8  ;;  %v306_v60 = vsel %vm298_vm3, %v302_v59, 0  ;;  %v296_v63 = vor.u32 %v295_v58, %v292_v57  ;;  %v1577_v58 = vld [vmem:[#allocation5 + $0xf0] sm:$0xff]  }
  0x35   :  { %634 = vmatprep.subr.bf16.mxu1 %v1705_v9  ;;  %513 = vmatpush1.bf16.msra.mxu0 %v1557_v12  ;;  %v301_v53 = vsel %vm1822_vm5, 0, %v281_v50 }
  0x36   :  { %514 = vmatprep.subr.bf16.mxu0 %v1705_v9  ;;  %v365_v61 = vshll.u32 %v301_v53, 16  ;;  %v311_v2 = vsel %vm310_vm8, %v306_v60, %v296_v63  ;;  %v312_v8 = vsel %vm310_vm8, %v296_v63, 0 }
  0x37   :  { %v370_v4 = vshll.u32 %v311_v2, 16  ;;  %v321_v10 = vrot.slane %v311_v2, 1  ;;  %v322_v11 = vrot.slane %v312_v8, 1 }
  0x38   :  { %v367_v1 = vrot.slane %v365_v61, 1 }
  0x39   :  { %515 = vmatpush1.bf16.msra.mxu0 %v1559_v13  ;;  %v323_v12 = vsel %vm317_vm10, %v321_v10, %v322_v11  ;;  %v390_v13 = vshrl.u32 %v311_v2, 16  ;;  %v1586_v11 = vld [vmem:[#allocation5 + $0x108] sm:$0xff]  }
  0x3a   :  { %516 = vmatprep.subr.bf16.mxu0 %v1705_v9 }
  0x3b   :  { %1450 = vmatmul.mubr.msk.bf16.gmra.mxu0 %vm95_vm1, %v1545_v6  ;;  %v372_v6 = vrot.slane %v370_v4, 1 }
  0x3d   :  { %517 = vmatpush1.bf16.msra.mxu0 %v1561_v14  ;;  %v396_v14 = vshrl.u32 %v312_v8, 16 }
  0x3e   :  { %518 = vmatprep.subr.bf16.mxu0 %v1705_v9 }
  0x41   :  { %519 = vmatpush1.bf16.msra.mxu0 %v1563_v15  ;;  %v399_v15 = vshll.u32 %v312_v8, 16 }
  0x42   :  { %520 = vmatprep.subr.bf16.mxu0 %v1705_v9 }
  0x45   :  { %521 = vmatpush1.bf16.msra.mxu0 %v1565_v16  ;;  %v392_v16 = vrot.slane %v390_v13, 1 }
  0x46   :  { %522 = vmatprep.subr.bf16.mxu0 %v1705_v9 }
  0x49   :  { %523 = vmatpush1.bf16.msra.mxu0 %v1567_v43 }
  0x4a   :  { %532 = vmatprep.subr.bf16.mxu0 %v1705_v9 }
  0x4d   :  { %533 = vmatpush2.bf16.msra.mxu0 %v1569_v48 }
  0x4e   :  { %534 = vmatprep.subr.bf16.mxu0 %v1705_v9 }
  0x51   :  { %535 = vmatpush2.bf16.msra.mxu0 %v1573_v54 }
  0x52   :  { %536 = vmatprep.subr.bf16.mxu0 %v1705_v9 }
  0x55   :  { %537 = vmatpush2.bf16.msra.mxu0 %v1574_v62 }
  0x56   :  { %538 = vmatprep.subr.bf16.mxu0 %v1705_v9 }
  0x59   :  { %539 = vmatpush2.bf16.msra.mxu0 %v1575_v3  ;;  %v1579_v3 = vld [vmem:[#allocation5 + $0xe0] sm:$0xff]  }
  0x5a   :  { %801 = vmatprep.subr.bf16.mxu0 %v1705_v9 }
  0xeb   :  { %v139_v17 = vpop.f32.mrf.mxu0 }
  0xed   :  { %v1443_v18 = vpop.f32.mrf.mxu0 }
  0xee   :  { %v398_v18 = vrot.slane %v396_v14, 1 }
  0xef   :  { %v142_v19 = vpop.f32.mrf.mxu0 }
  0xf0   :  { %v161_v21 = vpack.c.bf16 %v142_v19, %v139_v17  ;;  %v393_v17 = vrot.slane %v370_v4, 2  ;;  %v401_v19 = vrot.slane %v399_v15, 2  ;;  %v1580_v4 = vld [vmem:[#allocation5 + $0xd8] sm:$0xff]  }
  0xf1   :  { %v1444_v22 = vpop.f32.mrf.mxu0 }
  0xf2   :  { %1462 = vmatmul.mubr.msk.bf16.vlgmr.msra.gmra.mxu1 %vm196_vm2, %v161_v21  ;;  %v402_v21 = vor.u32 %v401_v19, %v398_v18  ;;  %v1588_v18 = vld [vmem:[#allocation7 + $0x78] sm:$0xff]   ;;  %v1589_v19 = vld [vmem:[#allocation7 + $0x70] sm:$0xff]  }
  0xf3   :  { %v147_v23 = vpop.f32.mrf.mxu0  ;;  %1465 = vmatprep.mubr.msk.bf16.mxu1 %vm1704_vm0, %v1703_v0  ;;  %635 = vmatpush1.bf16.msra.mxu1 %v1550_v20  ;;  %v394_v20 = vor.u32 %v393_v17, %v392_v16 }
  0xf4   :  { %636 = vmatprep.subr.bf16.mxu1 %v1705_v9 }
  0xf5   :  { %v1447_v25 = vpop.f32.mrf.mxu0  ;;  %v403_v22 = vsel %vm375_vm11, %v394_v20, %v402_v21  ;;  %v1591_v20 = vld [vmem:[#allocation7 + $0xb8] sm:$0xff]   ;;  %v1592_v21 = vld [vmem:[#allocation7 + $0x60] sm:$0xff]  }
  0xf6   :  { %v694_v25 = vrot.slane %v311_v2, 2 }
  0xf7   :  { %v150_v26 = vpop.f32.mrf.mxu0  ;;  %637 = vmatpush1.bf16.msra.mxu1 %v1551_v24 }
  0xf8   :  { %v162_v28 = vpack.c.bf16 %v150_v26, %v147_v23  ;;  %638 = vmatprep.subr.bf16.mxu1 %v1705_v9  ;;  %v687_v23 = vrot.slane %v301_v53, 1  ;;  %v695_v26 = vrot.slane %v312_v8, 2  ;;  %v1584_v8 = vld [vmem:[#allocation5 + $0x118] sm:$0xff]  }
  0xf9   :  { %v1448_v29 = vpop.f32.mrf.mxu0 }
  0xfa   :  { %1466 = vmatmul.mubr.msk.bf16.gmra.mxu1 %vm196_vm2, %v162_v28  ;;  %v688_v24 = vsel %vm317_vm10, %v687_v23, %v321_v10  ;;  %v1585_v10 = vld [vmem:[#allocation5 + $0x110] sm:$0xff]   ;;  %v1594_v23 = vld [vmem:[#allocation7 + $0x58] sm:$0xff]  }
  0xfb   :  { %v155_v30 = vpop.f32.mrf.mxu0  ;;  %1469 = vmatprep.mubr.msk.bf16.mxu1 %vm1704_vm0, %v1703_v0  ;;  %639 = vmatpush1.bf16.msra.mxu1 %v1552_v27  ;;  %v363_v0 = vshrl.u32 %v301_v53, 16  ;;  %v1845_v27 = vsel %vm690_vm12, %v694_v25, %v695_v26  ;;  %v1596_v25 = vld [vmem:[#allocation7 + $0x50] sm:$0xff]   ;;  %v1597_v26 = vld [vmem:[#allocation7 + $0xa0] sm:$0xff]  }
  0xfc   :  { %640 = vmatprep.subr.bf16.mxu1 %v1705_v9  ;;  %v163_v33 = vpack.c.bf16 %v155_v30, %v155_v30 }
  0xfd   :  { %v1451_v32 = vpop.f32.mrf.mxu0  ;;  %v368_v5 = vor.u32 %v367_v1, %v363_v0  ;;  %v1578_v1 = vld [vmem:[#allocation5 + $0xe8] sm:$0xff]  }
  0xff   :  { %v158_v34 = vpop.f32.mrf.mxu0  ;;  %641 = vmatpush1.bf16.msra.mxu1 %v1554_v31  ;;  %v373_v7 = vsel %vm349_vm9, %v368_v5, %v372_v6  ;;  %v1581_v5 = vld [vmem:[#allocation5 + $0xd0] sm:$0xff]   ;;  %v1582_v6 = vld [vmem:[#allocation5 + $0xc8] sm:$0xff]  }
 0x100   :  { %642 = vmatprep.subr.bf16.mxu1 %v1705_v9  ;;  %1324 = vmatprep.mubr.msk.bf16.mxu0 %vm196_vm2, %v373_v7  ;;  %v1583_v7 = vld [vmem:[#allocation5 + $0xc0] sm:$0xff]  }
 0x101   :  { %v1452_v36 = vpop.f32.mrf.mxu0 }
 0x102   :  { %1470 = vmatmul.mubr.msk.bf16.gmra.mxu1 %vm196_vm2, %v163_v33 }
 0x103   :  { %643 = vmatpush1.bf16.msra.mxu1 %v1556_v35  ;;  %1338 = vmatprep.mubr.msk.bf16.mxu1 %vm196_vm2, %v301_v53 }
 0x104   :  { %644 = vmatprep.subr.bf16.mxu1 %v1705_v9 }
 0x107   :  { %645 = vmatpush1.bf16.msra.mxu1 %v1558_v37 }
 0x108   :  { %646 = vmatprep.subr.bf16.mxu1 %v1705_v9 }
 0x10b   :  { %647 = vmatpush1.bf16.msra.mxu1 %v1560_v38 }
 0x10c   :  { %648 = vmatprep.subr.bf16.mxu1 %v1705_v9 }
 0x10f   :  { %649 = vmatpush1.bf16.msra.mxu1 %v1562_v39 }
 0x110   :  { %658 = vmatprep.subr.bf16.mxu1 %v1705_v9 }
 0x113   :  { %659 = vmatpush2.bf16.msra.mxu1 %v1564_v40 }
 0x114   :  { %660 = vmatprep.subr.bf16.mxu1 %v1705_v9 }
 0x117   :  { %661 = vmatpush2.bf16.msra.mxu1 %v1566_v41 }
 0x118   :  { %662 = vmatprep.subr.bf16.mxu1 %v1705_v9 }
 0x11b   :  { %663 = vmatpush2.bf16.msra.mxu1 %v1568_v44 }
 0x11c   :  { %664 = vmatprep.subr.bf16.mxu1 %v1705_v9 }
 0x11f   :  { %665 = vmatpush2.bf16.msra.mxu1 %v1570_v49 }
 0x120   :  { %1473 = vmatprep.subr.bf16.mxu1 %v1588_v18 }
 0x1b2   :  { %v240_v28 = vpop.f32.mrf.mxu1 }
 0x1b4   :  { %v1463_v29 = vpop.f32.mrf.mxu1 }
 0x1b5   :  { %v1600_v29 = vld [vmem:[#allocation7 + $0x40] sm:$0xff]  }
 0x1b6   :  { %v243_v30 = vpop.f32.mrf.mxu1 }
 0x1b7   :  { %v1847_v31 = vpack.c.bf16 %v243_v30, %v240_v28  ;;  %v1599_v28 = vld [vmem:[#allocation7 + $0x98] sm:$0xff]   ;;  %v1601_v30 = vld [vmem:[#allocation7 + $0x90] sm:$0xff]  }
 0x1b8   :  { %v1464_v32 = vpop.f32.mrf.mxu1 }
 0x1b9   :  { %667 = vmatmul.mubr.bf16.vlgmr.msra.gmra.mxu1 %v1847_v31  ;;  %v353_v34 = vshll.u32 %v1847_v31, 16  ;;  %v351_v40 = vshrl.u32 %v1847_v31, 16  ;;  %v685_v13 = vrot.slane %v1847_v31, 1  ;;  %v1886_v31 = vld [vmem:[#allocation7 + $0x38] sm:$0xff]   ;;  %v1603_v32 = vld [vmem:[#allocation7 + $0x88] sm:$0xff]  }
 0x1ba   :  { %v248_v33 = vpop.f32.mrf.mxu1  ;;  %1339 = vmatprep.mubr.msk.bf16.mxu1 %vm196_vm2, %v323_v12  ;;  %v1587_v12 = vld [vmem:[#allocation5 + $0x100] sm:$0xff]   ;;  %1474 = vmatpush3.bf16.msra.mxu1 %v1588_v18 }
 0x1bb   :  { %v355_v37 = vrot.slane %v353_v34, 1  ;;  %1475 = vmatprep.subr.bf16.mxu1 %v1589_v19 }
 0x1bc   :  { %v1467_v35 = vpop.f32.mrf.mxu1 }
 0x1bd   :  { %v356_v45 = vor.u32 %v355_v37, %v351_v40 }
 0x1be   :  { %v251_v36 = vpop.f32.mrf.mxu1  ;;  %1476 = vmatpush3.bf16.msra.mxu1 %v1589_v19 }
 0x1bf   :  { %v1852_v38 = vpack.c.bf16 %v251_v36, %v248_v33  ;;  %v1605_v33 = vld [vmem:[#allocation7 + $0x80] sm:$0xff]  }
 0x1c0   :  { %v1468_v39 = vpop.f32.mrf.mxu1 }
 0x1c1   :  { %v358_v41 = vshll.u32 %v1852_v38, 16  ;;  %v376_v42 = vshrl.u32 %v1852_v38, 16  ;;  %v318_v48 = vrot.slane %v1852_v38, 1  ;;  %v691_v16 = vrot.slane %v1852_v38, 2 }
 0x1c2   :  { %v256_v43 = vpop.f32.mrf.mxu1 }
 0x1c3   :  { %v1857_v44 = vpack.c.bf16 %v256_v43, %v256_v43  ;;  %v360_v46 = vrot.slane %v358_v41, 1  ;;  %v378_v55 = vrot.slane %v376_v42, 1  ;;  %v379_v59 = vrot.slane %v358_v41, 2 }
 0x1c4   :  { %v1471_v49 = vpop.f32.mrf.mxu1  ;;  %v686_v14 = vsel %vm317_vm10, %v685_v13, %v318_v48 }
 0x1c5   :  { %v382_v50 = vshrl.u32 %v1857_v44, 16  ;;  %v385_v52 = vshll.u32 %v1857_v44, 16  ;;  %v361_v53 = vsel %vm349_vm9, %v356_v45, %v360_v46  ;;  %v319_v54 = vrot.slane %v1857_v44, 1 }
 0x1c6   :  { %541 = vmatmul.mubr.bf16.vlgmr.msra.gmra.mxu0 %v361_v53  ;;  %v259_v56 = vpop.f32.mrf.mxu1  ;;  %v380_v0 = vor.u32 %v379_v59, %v378_v55  ;;  %v692_v15 = vrot.slane %v1857_v44, 2 }
 0x1c7   :  { %802 = vmatpush1.bf16.msra.mxu0 %v1576_v47  ;;  %v320_v57 = vsel %vm317_vm10, %v318_v48, %v319_v54  ;;  %1325 = vmatprep.mubr.msk.bf16.mxu0 %vm196_vm2, %v403_v22  ;;  %v384_v60 = vrot.slane %v382_v50, 1  ;;  %v387_v61 = vrot.slane %v385_v52, 2  ;;  %v1593_v22 = vld [vmem:[#allocation7 + $0xb0] sm:$0xff]   ;;  %v1354_v54 = vld [vmem:[%s1921_s6] ss:$0 sm:$0xff] }
 0x1c8   :  { %675 = vmatmul.mubr.bf16.gmra.mxu1 %v320_v57  ;;  %803 = vmatprep.subr.bf16.mxu0 %v1705_v9  ;;  %v1472_v62 = vpop.f32.mrf.mxu1  ;;  %v693_v17 = vsel %vm690_vm12, %v691_v16, %v692_v15 }
 0x1c9   :  { %v388_v63 = vor.u32 %v387_v61, %v384_v60 }
 0x1cb   :  { %804 = vmatpush1.bf16.msra.mxu0 %v1577_v58  ;;  %v389_v2 = vsel %vm375_vm11, %v380_v0, %v388_v63 }
 0x1cc   :  { %805 = vmatprep.subr.bf16.mxu0 %v1705_v9 }
 0x1ce   :  { %549 = vmatmul.mubr.bf16.gmra.mxu0 %v389_v2 }
 0x1cf   :  { %806 = vmatpush1.bf16.msra.mxu0 %v1578_v1  ;;  %1352 = vmatprep.mubr.msk.bf16.mxu0 %vm196_vm2, %v688_v24  ;;  %v1595_v24 = vld [vmem:[#allocation7 + $0xa8] sm:$0xff]  }
 0x1d0   :  { %807 = vmatprep.subr.bf16.mxu0 %v1705_v9 }
 0x1d3   :  { %808 = vmatpush1.bf16.msra.mxu0 %v1579_v3 }
 0x1d4   :  { %809 = vmatprep.subr.bf16.mxu0 %v1705_v9 }
 0x1d7   :  { %810 = vmatpush1.bf16.msra.mxu0 %v1580_v4 }
 0x1d8   :  { %811 = vmatprep.subr.bf16.mxu0 %v1705_v9 }
 0x1db   :  { %812 = vmatpush1.bf16.msra.mxu0 %v1581_v5 }
 0x1dc   :  { %813 = vmatprep.subr.bf16.mxu0 %v1705_v9 }
 0x1df   :  { %814 = vmatpush1.bf16.msra.mxu0 %v1582_v6 }
 0x1e0   :  { %815 = vmatprep.subr.bf16.mxu0 %v1705_v9 }
 0x1e3   :  { %816 = vmatpush1.bf16.msra.mxu0 %v1583_v7 }
 0x1e4   :  { %825 = vmatprep.subr.bf16.mxu0 %v1705_v9 }
 0x1e7   :  { %826 = vmatpush2.bf16.msra.mxu0 %v1584_v8 }
 0x1e8   :  { %827 = vmatprep.subr.bf16.mxu0 %v1705_v9 }
 0x1eb   :  { %828 = vmatpush2.bf16.msra.mxu0 %v1585_v10 }
 0x1ec   :  { %829 = vmatprep.subr.bf16.mxu0 %v1705_v9 }
 0x1ef   :  { %830 = vmatpush2.bf16.msra.mxu0 %v1586_v11 }
 0x1f0   :  { %831 = vmatprep.subr.bf16.mxu0 %v1705_v9  ;;  %v1590_v9 = vld [vmem:[#allocation7 + $0x68] sm:$0xff]  }
 0x1f1   :  { %1477 = vmatprep.subr.bf16.mxu1 %v1590_v9 }
 0x1f2   :  { %1478 = vmatpush3.bf16.msra.mxu1 %v1590_v9 }
 0x1f3   :  { %832 = vmatpush2.bf16.msra.mxu0 %v1587_v12  ;;  %1479 = vmatprep.subr.bf16.mxu1 %v1592_v21 }
 0x1f4   :  { %1513 = vmatprep.subr.bf16.mxu0 %v1591_v20 }
 0x1f6   :  { %834 = vmatmul.mubr.bf16.vlgmr.msra.gmra.mxu0 %v686_v14  ;;  %1480 = vmatpush3.bf16.msra.mxu1 %v1592_v21 }
 0x1f7   :  { %1353 = vmatprep.mubr.msk.bf16.mxu0 %vm196_vm2, %v1845_v27  ;;  %1514 = vmatpush3.bf16.msra.mxu0 %v1591_v20  ;;  %v1598_v27 = vld [vmem:[#allocation7 + $0x48] sm:$0xff]  }
 0x1f8   :  { %1515 = vmatprep.subr.bf16.mxu0 %v1593_v22  ;;  %1481 = vmatprep.subr.bf16.mxu1 %v1594_v23 }
 0x1fa   :  { %1482 = vmatpush3.bf16.msra.mxu1 %v1594_v23 }
 0x1fb   :  { %1516 = vmatpush3.bf16.msra.mxu0 %v1593_v22  ;;  %1483 = vmatprep.subr.bf16.mxu1 %v1596_v25  ;;  %v1604_v22 = vld [vmem:[#allocation7 + $0x30] sm:$0xff]  }
 0x1fc   :  { %1517 = vmatprep.subr.bf16.mxu0 %v1595_v24 }
 0x1fe   :  { %842 = vmatmul.mubr.bf16.gmra.mxu0 %v693_v17  ;;  %1484 = vmatpush3.bf16.msra.mxu1 %v1596_v25 }
 0x1ff   :  { %1518 = vmatpush3.bf16.msra.mxu0 %v1595_v24  ;;  %1485 = vmatprep.subr.bf16.mxu1 %v1598_v27 }
 0x200   :  { %1519 = vmatprep.subr.bf16.mxu0 %v1597_v26 }
 0x202   :  { %1486 = vmatpush3.bf16.msra.mxu1 %v1598_v27  ;;  %v1606_v27 = vld [vmem:[#allocation7 + $0x28] sm:$0xff]  }
 0x203   :  { %1520 = vmatpush3.bf16.msra.mxu0 %v1597_v26  ;;  %1487 = vmatprep.subr.bf16.mxu1 %v1600_v29 }
 0x204   :  { %1521 = vmatprep.subr.bf16.mxu0 %v1599_v28 }
 0x206   :  { %1488 = vmatpush3.bf16.msra.mxu1 %v1600_v29 }
 0x207   :  { %1522 = vmatpush3.bf16.msra.mxu0 %v1599_v28  ;;  %1493 = vmatprep.subr.bf16.mxu1 %v1886_v31 }
 0x208   :  { %1523 = vmatprep.subr.bf16.mxu0 %v1601_v30 }
 0x20b   :  { %1524 = vmatpush3.bf16.msra.mxu0 %v1601_v30  ;;  %v1607_v30 = vld [vmem:[#allocation7 + $0x20] sm:$0xff]  }
 0x20c   :  { %1525 = vmatprep.subr.bf16.mxu0 %v1603_v32 }
 0x20f   :  { %1526 = vmatpush3.bf16.msra.mxu0 %v1603_v32  ;;  %v1608_v32 = vld [vmem:[#allocation7 + $0x18] sm:$0xff]  }
 0x210   :  { %1527 = vmatprep.subr.bf16.mxu0 %v1605_v33 }
 0x213   :  { %1528 = vmatpush3.bf16.msra.mxu0 %v1605_v33  ;;  %v1609_v33 = vld [vmem:[#allocation7 + $0x10] sm:$0xff]  }
 0x279   :  { %v668_v34 = vpop.f32.mrf.mxu1 }
 0x27b   :  { %v670_v35 = vpop.f32.mrf.mxu1 }
 0x27d   :  { %v671_v36 = vpop.f32.mrf.mxu1 }
 0x27f   :  { %v673_v37 = vpop.f32.mrf.mxu1 }
 0x286   :  { %v542_v38 = vpop.f32.mrf.mxu0 }
 0x287   :  { %v669_v50 = vadd.f32 %v668_v34, %v542_v38  ;;  %v1611_v34 = vld [vmem:[#allocation7] sm:$0xff]  }
 0x288   :  { %v544_v39 = vpop.f32.mrf.mxu0  ;;  %v676_v40 = vpop.f32.mrf.mxu1 }
 0x28a   :  { %v545_v41 = vpop.f32.mrf.mxu0  ;;  %v678_v42 = vpop.f32.mrf.mxu1 }
 0x28b   :  { %v672_v56 = vadd.f32 %v671_v36, %v545_v41 }
 0x28c   :  { %v547_v43 = vpop.f32.mrf.mxu0  ;;  %v679_v44 = vpop.f32.mrf.mxu1 }
 0x28e   :  { %v550_v45 = vpop.f32.mrf.mxu0  ;;  %v681_v46 = vpop.f32.mrf.mxu1 }
 0x28f   :  { %v677_v61 = vadd.f32 %v676_v40, %v550_v45 }
 0x290   :  { %v552_v47 = vpop.f32.mrf.mxu0 }
 0x292   :  { %v553_v48 = vpop.f32.mrf.mxu0 }
 0x293   :  { %v680_v4 = vadd.f32 %v679_v44, %v553_v48 }
 0x294   :  { %v555_v49 = vpop.f32.mrf.mxu0 }
 0x2b6   :  { %v835_v52 = vpop.f32.mrf.mxu0 }
 0x2b7   :  { %v850_v53 = vadd.f32 %v835_v52, %v669_v50  ;;  %v1379_v50 = vld [vmem:[%s1921_s6 + $0x1] ss:$0 sm:$0xff]  ;;  %s1672_s6 = scalar_lea.vmem %s1282_s8, 256 }
 0x2b8   :  { %v837_v55 = vpop.f32.mrf.mxu0  ;;  %p1673_p1 = scmp.ne.s32.totalorder %s1282_s8, %s1672_s6  ;;  %p1678_p3 = scmp.lt.s32.totalorder %s1672_s6, %s1672_s6 }
 0x2b9   :  { %v859_v58 = vadd.f32 %v1354_v54, %v850_v53 }
 0x2ba   :  { %v838_v57 = vpop.f32.mrf.mxu0  ;;  %p1679_p4 = por %p1678_p3, %p1677_p2 }
 0x2bb   :  { %v851_v59 = vadd.f32 %v838_v57, %v672_v56  ;;  %v863_v0 = vmax.f32 %v859_v58, 0.0 }
 0x2bc   :  { %v840_v60 = vpop.f32.mrf.mxu0  ;;  %p1680_p5 = pnand %p1679_p4, %p1673_p1 }
 0x2bd   :  { %v860_v62 = vadd.f32 %v1354_v54, %v851_v59 }
 0x2be   :  { %v843_v63 = vpop.f32.mrf.mxu0 }
 0x2bf   :  { %v864_v1 = vmax.f32 %v860_v62, 0.0  ;;  %v852_v2 = vadd.f32 %v843_v63, %v677_v61 }
 0x2c0   :  { %v845_v3 = vpop.f32.mrf.mxu0 }
 0x2c1   :  { %v867_v5 = vpack.c.bf16 %v864_v1, %v863_v0  ;;  %v861_v7 = vadd.f32 %v1354_v54, %v852_v2 }
 0x2c2   :  { %v846_v6 = vpop.f32.mrf.mxu0 }
 0x2c3   :  { %v853_v8 = vadd.f32 %v846_v6, %v680_v4  ;;  %1489 = vmatprep.mubr.bf16.mxu1 %v867_v5  ;;  %v870_v10 = vshrl.u32 %v867_v5, 16  ;;  %v873_v11 = vshll.u32 %v867_v5, 16  ;;  %v865_v17 = vmax.f32 %v861_v7, 0.0 }
 0x2c4   :  { %v848_v12 = vpop.f32.mrf.mxu0 }
 0x2c5   :  { %v862_v13 = vadd.f32 %v1354_v54, %v853_v8  ;;  %v1114_v14 = vrot.slane %v873_v11, 1  ;;  %v872_v15 = vrot.slane %v870_v10, 7 }
 0x2c7   :  { %v866_v18 = vmax.f32 %v862_v13, 0.0  ;;  %v1115_v19 = vor.u32 %v1114_v14, %v870_v10  ;;  %v875_v20 = vor.u32 %v873_v11, %v872_v15 }
 0x2c9   :  { %v868_v9 = vpack.c.bf16 %v866_v18, %v865_v17  ;;  %v1122_v21 = vsel %vm1893_vm14, %v1115_v19, 0  ;;  %v885_v24 = vsel %vm1822_vm5, 0, %v875_v20 }
 0x2ca   :  { %1529 = vmatprep.mubr.bf16.mxu0 %v1122_v21 }
 0x2cb   :  { %v881_v23 = vshll.u32 %v868_v9, 16  ;;  %1490 = vmatmul.mubr.bf16.vlgmr.msra.gmra.mxu1 %v868_v9  ;;  %v878_v25 = vshrl.u32 %v868_v9, 16 }
 0x2cc   :  { %1494 = vmatpush3.bf16.msra.mxu1 %v1886_v31  ;;  %1509 = vmatprep.mubr.bf16.mxu1 %v885_v24  ;;  %v1610_v31 = vld [vmem:[#allocation7 + $0x8] sm:$0xff]  }
 0x2cd   :  { %v1117_v26 = vrot.slane %v881_v23, 1  ;;  %1495 = vmatprep.subr.bf16.mxu1 %v1604_v22  ;;  %v880_v35 = vrot.slane %v878_v25, 7 }
 0x2cf   :  { %v1118_v28 = vor.u32 %v1117_v26, %v878_v25  ;;  %v883_v36 = vor.u32 %v881_v23, %v880_v35 }
 0x2d0   :  { %1496 = vmatpush3.bf16.msra.mxu1 %v1604_v22 }
 0x2d1   :  { %v1123_v29 = vsel %vm1893_vm14, %v1118_v28, 0  ;;  %1497 = vmatprep.subr.bf16.mxu1 %v1606_v27  ;;  %v886_v37 = vsel %vm1822_vm5, 0, %v883_v36 }
 0x2d2   :  { %1530 = vmatmul.mubr.bf16.vlgmr.msra.gmra.mxu0 %v1123_v29 }
 0x2d4   :  { %1498 = vmatpush3.bf16.msra.mxu1 %v1606_v27 }
 0x2d5   :  { %1499 = vmatprep.subr.bf16.mxu1 %v1607_v30 }
 0x2d8   :  { %1500 = vmatpush3.bf16.msra.mxu1 %v1607_v30 }
 0x2d9   :  { %1501 = vmatprep.subr.bf16.mxu1 %v1608_v32 }
 0x2dc   :  { %1502 = vmatpush3.bf16.msra.mxu1 %v1608_v32 }
 0x2dd   :  { %1503 = vmatprep.subr.bf16.mxu1 %v1609_v33 }
 0x2e0   :  { %1504 = vmatpush3.bf16.msra.mxu1 %v1609_v33 }
 0x2e1   :  { %1505 = vmatprep.subr.bf16.mxu1 %v1610_v31 }
 0x2e4   :  { %1506 = vmatpush3.bf16.msra.mxu1 %v1610_v31 }
 0x2e5   :  { %1507 = vmatprep.subr.bf16.mxu1 %v1611_v34 }
 0x2e8   :  { %1508 = vmatpush3.bf16.msra.mxu1 %v1611_v34 }
 0x2eb   :  { %1510 = vmatmul.mubr.bf16.vlgmr.msra.gmra.mxu1 %v886_v37 }
 0x38b   :  { %v1491_v38 = vpop.f32.mrf.mxu1 }
 0x38d   :  { %v1002_v39 = vpop.f32.mrf.mxu1 }
 0x38f   :  { %v1492_v40 = vpop.f32.mrf.mxu1 }
 0x391   :  { %v1005_v42 = vpop.f32.mrf.mxu1 }
 0x392   :  { %v1531_v41 = vpop.f32.mrf.mxu0 }
 0x394   :  { %v1223_v43 = vpop.f32.mrf.mxu0 }
 0x396   :  { %v1532_v49 = vpop.f32.mrf.mxu0 }
 0x398   :  { %v1226_v58 = vpop.f32.mrf.mxu0 }
 0x3ab   :  { %v1511_v44 = vpop.f32.mrf.mxu1 }
 0x3ac   :  { %v1108_v45 = vadd.f32 %v1511_v44, %v1491_v38 }
 0x3ad   :  { %v1099_v46 = vpop.f32.mrf.mxu1 }
 0x3ae   :  { %v1240_v47 = vadd.f32 %v1531_v41, %v1108_v45  ;;  %v1100_v48 = vadd.f32 %v1099_v46, %v1002_v39 }
 0x3af   :  { %v1512_v52 = vpop.f32.mrf.mxu1 }
 0x3b0   :  { %v1238_v51 = vadd.f32 %v1223_v43, %v1100_v48  ;;  %v1111_v53 = vadd.f32 %v1512_v52, %v1492_v40  ;;  %v1249_v55 = vadd.f32 %v1379_v50, %v1240_v47 }
 0x3b1   :  { %v1102_v54 = vpop.f32.mrf.mxu1 }
 0x3b2   :  { %v1241_v56 = vadd.f32 %v1532_v49, %v1111_v53  ;;  %v1103_v57 = vadd.f32 %v1102_v54, %v1005_v42  ;;  %v1247_v59 = vadd.f32 %v1379_v50, %v1238_v51  ;;  %v1253_v62 = vmax.f32 %v1249_v55, 0.0 }
 0x3b4   :  { %v1250_v60 = vadd.f32 %v1379_v50, %v1241_v56  ;;  %v1239_v61 = vadd.f32 %v1226_v58, %v1103_v57  ;;  %v1251_v1 = vmax.f32 %v1247_v59, 0.0 }
 0x3b6   :  { %v1254_v63 = vmax.f32 %v1250_v60, 0.0  ;;  %v1248_v0 = vadd.f32 %v1379_v50, %v1239_v61 }
 0x3b8   :  { %v1252_v2 = vmax.f32 %v1248_v0, 0.0  ;;  %v1396_v3 = vpack.c.bf16 %v1254_v63, %v1253_v62 }
 0x3ba   :  { %v1391_v4 = vpack.c.bf16 %v1252_v2, %v1251_v1  ;;  %1397 = vst [vmem:[#allocation8 + $0x8] sm:$0xff] %v1396_v3  }
 0x3bc   :  { %1392 = vst [vmem:[#allocation8] sm:$0xff] %v1391_v4  }
 0x3bd   :  { %1683 = shalt.err (!%p1680_p5)
}
 0x3be   :  { %1287 = dma.vmem_to_hbm [thread:$0]  %s1282_s8, 256, %s1922_s7, [#allocation4], %s1700_s29, %s1700_s29, %s1701_s30  }
 0x3bf   :  { %1696 = dma.done.wait [#allocation4], 256  }
 0x3c0   :  { %1697 = vsyncadd [#allocation4], 4294967040 }
 0x3c1   :  { %1291 = vsyncpa [#allocation3], 1 }
 0x3c2   :  { %1292 = vsyncpa [#allocation6], 1 }
 0x3c3   :  { %1293 = vsyncpa [#allocation4], 1 }

</bundles_post_ra>
